<compile_context>
chip_gen: v7x
topology: tpu7x:2x2x1
jax: 0.10.0
libtpu: 0.0.40
codegen_flags: <defaults>
</compile_context>

<pallas_src>
import functools

import jax
import jax.numpy as jnp
from jax.experimental import pallas as pl
from jax.experimental.pallas import tpu as pltpu


def _round_up(x, m):
    return (x + m - 1) // m * m


# ----------------------------------------------------------------------------
# Fused kernel: backbone stand-in + MIL dual-branch head (single grid step)
# ----------------------------------------------------------------------------
def _fused_kernel(xbar_ref, w_pe_ref, b_pe_ref, w_head_ref, b_head_ref,
                  out_ref, stack_ref, *, n_valid, cnt, b_pad):
    # xbar_ref   : (B_pad, PD_pad)  f32  patch-mean of the input images
    # w_pe_ref   : (PD_pad, F_pad)  mm   patch-embed weight
    # b_pe_ref   : (1, F_pad)       f32  patch-embed bias
    # w_head_ref : (F_pad, HO_pad)  mm   fused head weights: lanes [0:OUT]=w1,
    #                                    lanes [OUT:2*OUT]=w2
    # b_head_ref : (1, HO_pad)      f32  fused head biases  (same lane layout)
    # out_ref    : (STACK, HO_pad)  f32  rows 0:B -> per-image heads,
    #                                    rows b_pad:b_pad+G -> per-bag head
    # stack_ref  : (STACK, F_pad)   f32  VMEM scratch: [pooled ; bag-max]
    mm_dtype = w_pe_ref.dtype

    # Backbone stand-in: by linearity, mean_patches(X @ W + b) == xbar @ W + b
    # -> one batched MXU matmul on the already-f32-averaged xbar.
    pooled = (jnp.dot(xbar_ref[...].astype(mm_dtype), w_pe_ref[...],
                      preferred_element_type=jnp.float32)
              + b_pe_ref[...])                                # (B_pad, F_pad) f32

    # Dropout = identity in eval mode.

    # Stack [pooled rows ; per-bag max rows] along sublanes so BOTH linear
    # heads run as ONE MXU matmul against the lane-fused [w1 | w2] slab.
    stack_ref[...] = jnp.zeros_like(stack_ref)
    stack_ref[0:b_pad, :] = pooled
    n_groups = n_valid // cnt
    for g in range(n_groups):                 # viewed_pooled.max(1)[0], per bag
        stack_ref[pl.ds(b_pad + g, 1), :] = jnp.max(
            pooled[g * cnt:(g + 1) * cnt, :], axis=0, keepdims=True)

    out_ref[...] = (jnp.dot(stack_ref[...].astype(mm_dtype), w_head_ref[...],
                            preferred_element_type=jnp.float32)
                    + b_head_ref[...])


# ----------------------------------------------------------------------------
# One-time parameter preparation (padding + casts hoisted off the call path)
# ----------------------------------------------------------------------------
def prepare_params(params, *, matmul_dtype=jnp.bfloat16):
    w_pe, b_pe = params["w_pe"], params["b_pe"]
    w1, b1 = params["w1"], params["b1"]
    w2, b2 = params["w2"], params["b2"]
    patch = params["patch"]

    PD, F = w_pe.shape
    OUT = w1.shape[1]
    assert 2 * OUT <= 128, "fused head slab assumes both heads fit in one lane tile"

    PD_pad = _round_up(PD, 128)
    F_pad = _round_up(F, 128)
    HO_pad = 128  # fused [w1 | w2] lane slab

    w_pe_p = jnp.pad(w_pe, ((0, PD_pad - PD), (0, F_pad - F))).astype(matmul_dtype)
    b_pe_p = jnp.pad(b_pe.reshape(1, F).astype(jnp.float32),
                     ((0, 0), (0, F_pad - F)))

    w_head = jnp.zeros((F, HO_pad), jnp.float32)
    w_head = w_head.at[:, 0:OUT].set(w1.astype(jnp.float32))
    w_head = w_head.at[:, OUT:2 * OUT].set(w2.astype(jnp.float32))
    w_head_p = jnp.pad(w_head, ((0, F_pad - F), (0, 0))).astype(matmul_dtype)

    b_head_p = jnp.zeros((1, HO_pad), jnp.float32)
    b_head_p = b_head_p.at[:, 0:OUT].set(b1.reshape(1, OUT).astype(jnp.float32))
    b_head_p = b_head_p.at[:, OUT:2 * OUT].set(b2.reshape(1, OUT).astype(jnp.float32))

    return {
        "patch": patch, "PD": PD, "F": F, "OUT": OUT,
        "PD_pad": PD_pad, "F_pad": F_pad, "HO_pad": HO_pad,
        "w_pe_p": w_pe_p, "b_pe_p": b_pe_p,
        "w_head_p": w_head_p, "b_head_p": b_head_p,
    }


# ----------------------------------------------------------------------------
# Forward wrapper: patch-mean straight from x + single fused pallas_call
# ----------------------------------------------------------------------------
def dual_branch_mil_forward(x, cnt, prep):
    patch = prep["patch"]
    PD, OUT = prep["PD"], prep["OUT"]
    PD_pad, F_pad, HO_pad = prep["PD_pad"], prep["F_pad"], prep["HO_pad"]

    B, C, H, W = x.shape
    assert B % cnt == 0, "batch size must be divisible by cnt (bag size)"
    assert C * patch * patch == PD
    G = B // cnt

    B_pad = _round_up(B, 8)
    G_pad = _round_up(G, 8)
    STACK = B_pad + G_pad

    # Patch mean computed directly from x (no (B, NP, PD) materialization and
    # no 6-D transpose); resulting (c, ph, pw) PD layout matches w_pe.
    xbar = x.reshape(B, C, H // patch, patch, W // patch, patch)
    xbar = xbar.mean(axis=(2, 4)).reshape(B, PD).astype(jnp.float32)
    xbar_p = jnp.pad(xbar, ((0, B_pad - B), (0, PD_pad - PD)))

    kernel = functools.partial(_fused_kernel, n_valid=B, cnt=cnt, b_pad=B_pad)

    out = pl.pallas_call(
        kernel,
        out_shape=jax.ShapeDtypeStruct((STACK, HO_pad), jnp.float32),
        grid=(1,),
        in_specs=[
            pl.BlockSpec((B_pad, PD_pad), lambda i: (0, 0)),
            pl.BlockSpec((PD_pad, F_pad), lambda i: (0, 0)),
            pl.BlockSpec((1, F_pad), lambda i: (0, 0)),
            pl.BlockSpec((F_pad, HO_pad), lambda i: (0, 0)),
            pl.BlockSpec((1, HO_pad), lambda i: (0, 0)),
        ],
        out_specs=pl.BlockSpec((STACK, HO_pad), lambda i: (0, 0)),
        scratch_shapes=[pltpu.VMEM((STACK, F_pad), jnp.float32)],
        compiler_params=pltpu.CompilerParams(
            dimension_semantics=("arbitrary",),
            # Tiny blocks; explicit cap keeps the plan inside the default
            # scoped-VMEM budget on every generation (v5e 16 MiB .. v7x 32 MiB).
            vmem_limit_bytes=32 * 1024 * 1024,
        ),
    )(xbar_p, prep["w_pe_p"], prep["b_pe_p"], prep["w_head_p"], prep["b_head_p"])

    # Slice the lane/sublane padding back off (views in the XLA wrapper).
    o1 = out[:B, 0:OUT]                      # last_linear(pooled)
    o3 = out[:B, OUT:2 * OUT]                # last_linear2(pooled)
    o2 = out[B_pad:B_pad + G, OUT:2 * OUT]   # last_linear2(bag max)
    return o1, o2, o3


# ----------------------------------------------------------------------------
# Pure-JAX reference (original op order: patchify -> embed -> mean -> heads)
# ----------------------------------------------------------------------------
def reference_forward(x, cnt, params):
    patch = params["patch"]
    B, C, H, W = x.shape
    NP = (H // patch) * (W // patch)
    PD = C * patch * patch
    patches = x.reshape(B, C, H // patch, patch, W // patch, patch)
    patches = patches.transpose(0, 2, 4, 1, 3, 5).reshape(B, NP, PD)
    emb = patches @ params["w_pe"] + params["b_pe"]                  # (B, NP, F)
    pooled = emb.mean(axis=1)                                        # (B, F)
    vmax = pooled.reshape(-1, cnt, pooled.shape[-1]).max(axis=1)     # (G, F)
    o1 = pooled @ params["w1"] + params["b1"]
    o2 = vmax @ params["w2"] + params["b2"]
    o3 = pooled @ params["w2"] + params["b2"]
    return o1, o2, o3


if __name__ == "__main__":
    # Small shapes consistent with the module's forward: 6 tiles, 3 per bag.
    B, C, H, W = 6, 4, 16, 16
    cnt = 3
    patch = 4
    n_features = 32
    out_features = 19

    key = jax.random.PRNGKey(0)
    k_x, k_pe, k_w1, k_w2 = jax.random.split(key, 4)

    x = jax.random.normal(k_x, (B, C, H, W), dtype=jnp.float32)

    PD = C * patch * patch
    params = {
        "patch": patch,
        "w_pe": 0.1 * jax.random.normal(k_pe, (PD, n_features), jnp.float32),
        "b_pe": 0.05 * jnp.ones((1, n_features), jnp.float32),
        "w1": 0.1 * jax.random.normal(k_w1, (n_features, out_features), jnp.float32),
        "b1": 0.02 * jnp.ones((1, out_features), jnp.float32),
        "w2": 0.1 * jax.random.normal(k_w2, (n_features, out_features), jnp.float32),
        "b2": -0.03 * jnp.ones((1, out_features), jnp.float32),
    }

    r1, r2, r3 = reference_forward(x, cnt, params)

    # Exact (f32 MXU operands) run, checked against the pure-JAX reference.
    prep_f32 = prepare_params(params, matmul_dtype=jnp.float32)
    o1, o2, o3 = dual_branch_mil_forward(x, cnt, prep_f32)
    jax.block_until_ready((o1, o2, o3))
    assert o1.shape == (B, out_features)
    assert o2.shape == (B // cnt, out_features)
    assert o3.shape == (B, out_features)
    assert jnp.allclose(o1, r1, rtol=1e-4, atol=1e-4)
    assert jnp.allclose(o2, r2, rtol=1e-4, atol=1e-4)
    assert jnp.allclose(o3, r3, rtol=1e-4, atol=1e-4)

    # Default (bf16 MXU operands, f32 mean/accumulation) run — loose tolerance.
    prep_bf16 = prepare_params(params, matmul_dtype=jnp.bfloat16)
    b1_, b2_, b3_ = dual_branch_mil_forward(x, cnt, prep_bf16)
    jax.block_until_ready((b1_, b2_, b3_))
    assert b1_.shape == (B, out_features)
    assert b2_.shape == (B // cnt, out_features)
    assert b3_.shape == (B, out_features)
    assert bool(jnp.all(jnp.isfinite(b1_)) & jnp.all(jnp.isfinite(b2_))
                & jnp.all(jnp.isfinite(b3_)))
    assert jnp.allclose(b1_, r1, rtol=5e-2, atol=5e-2)
    assert jnp.allclose(b2_, r2, rtol=5e-2, atol=5e-2)
    assert jnp.allclose(b3_, r3, rtol=5e-2, atol=5e-2)

    print("KERNEL_OK")
</pallas_src>

<mosaic_0001>
module attributes {stable_mosaic.version = 11 : i64} {
  func.func @_fused_kernel(%arg0: i32, %arg1: memref<8x128xf32, #tpu.memory_space<vmem>>, %arg2: memref<128x128xf32, #tpu.memory_space<vmem>>, %arg3: memref<1x128xf32, #tpu.memory_space<vmem>>, %arg4: memref<128x128xf32, #tpu.memory_space<vmem>>, %arg5: memref<1x128xf32, #tpu.memory_space<vmem>>, %arg6: memref<16x128xf32, #tpu.memory_space<vmem>>, %arg7: memref<16x128xf32, #tpu.memory_space<vmem>>) attributes {dimension_semantics = [#tpu.dimension_semantics<arbitrary>], iteration_bounds = array<i64: 1>, scalar_prefetch = 0 : i64, scratch_operands = 1 : i64, tpu.core_type = #tpu.core_type<tc>, window_params = [{pipeline_mode = #tpu.pipeline_mode<synchronous>, transform_indices = @transform_0, window_bounds = array<i64: 8, 128>}, {pipeline_mode = #tpu.pipeline_mode<synchronous>, transform_indices = @transform_1, window_bounds = array<i64: 128, 128>}, {pipeline_mode = #tpu.pipeline_mode<synchronous>, transform_indices = @transform_2, window_bounds = array<i64: 1, 128>}, {pipeline_mode = #tpu.pipeline_mode<synchronous>, transform_indices = @transform_3, window_bounds = array<i64: 128, 128>}, {pipeline_mode = #tpu.pipeline_mode<synchronous>, transform_indices = @transform_4, window_bounds = array<i64: 1, 128>}, {pipeline_mode = #tpu.pipeline_mode<synchronous>, transform_indices = @transform_5, window_bounds = array<i64: 16, 128>}]} {
    %c0 = arith.constant 0 : index
    %c0_0 = arith.constant 0 : index
    %0 = vector.load %arg1[%c0, %c0_0] : memref<8x128xf32, #tpu.memory_space<vmem>>, vector<8x128xf32>
    %c0_1 = arith.constant 0 : index
    %c0_2 = arith.constant 0 : index
    %1 = vector.load %arg2[%c0_1, %c0_2] : memref<128x128xf32, #tpu.memory_space<vmem>>, vector<128x128xf32>
    %cst = arith.constant dense<0.000000e+00> : vector<8x128xf32>
    %2 = tpu.matmul %0, %1, %cst {dimension_numbers = #tpu.dot_dimension_numbers<[1], [0], [0], [1], [0, 0, 1, 1], [], []>} : vector<8x128xf32>, vector<128x128xf32>, vector<8x128xf32> -> vector<8x128xf32>
    %c0_3 = arith.constant 0 : index
    %c0_4 = arith.constant 0 : index
    %3 = vector.load %arg3[%c0_3, %c0_4] : memref<1x128xf32, #tpu.memory_space<vmem>>, vector<1x128xf32>
    %4 = vector.broadcast %3 : vector<1x128xf32> to vector<8x128xf32>
    %5 = arith.addf %2, %4 : vector<8x128xf32>
    %cst_5 = arith.constant 0.000000e+00 : f32
    %6 = vector.broadcast %cst_5 : f32 to vector<16x128xf32>
    %c0_6 = arith.constant 0 : index
    %c0_7 = arith.constant 0 : index
    %7 = vector.load %arg7[%c0_6, %c0_7] : memref<16x128xf32, #tpu.memory_space<vmem>>, vector<16x128xf32>
    tpu.vector_store %arg7[%c0_6, %c0_7], %6 {strides = array<i32>} : memref<16x128xf32, #tpu.memory_space<vmem>>, vector<16x128xf32>,
    %c0_8 = arith.constant 0 : index
    %c0_9 = arith.constant 0 : index
    %8 = vector.load %arg7[%c0_8, %c0_9] : memref<16x128xf32, #tpu.memory_space<vmem>>, vector<8x128xf32>
    tpu.vector_store %arg7[%c0_8, %c0_9], %5 {strides = array<i32>} : memref<16x128xf32, #tpu.memory_space<vmem>>, vector<8x128xf32>,
    %9 = vector.extract_strided_slice %5 {offsets = [0, 0], sizes = [3, 128], strides = [1, 1]} : vector<8x128xf32> to vector<3x128xf32>
    %cst_10 = arith.constant dense<0xFF800000> : vector<128xf32>
    %10 = vector.multi_reduction <maximumf>, %9, %cst_10 [0] : vector<3x128xf32> to vector<128xf32>
    %11 = vector.shape_cast %10 : vector<128xf32> to vector<1x128xf32>
    %c8 = arith.constant 8 : index
    %c0_11 = arith.constant 0 : index
    %12 = vector.load %arg7[%c8, %c0_11] : memref<16x128xf32, #tpu.memory_space<vmem>>, vector<1x128xf32>
    tpu.vector_store %arg7[%c8, %c0_11], %11 {strides = array<i32>} : memref<16x128xf32, #tpu.memory_space<vmem>>, vector<1x128xf32>,
    %13 = vector.extract_strided_slice %5 {offsets = [3, 0], sizes = [3, 128], strides = [1, 1]} : vector<8x128xf32> to vector<3x128xf32>
    %cst_12 = arith.constant dense<0xFF800000> : vector<128xf32>
    %14 = vector.multi_reduction <maximumf>, %13, %cst_12 [0] : vector<3x128xf32> to vector<128xf32>
    %15 = vector.shape_cast %14 : vector<128xf32> to vector<1x128xf32>
    %c9 = arith.constant 9 : index
    %c0_13 = arith.constant 0 : index
    %16 = vector.load %arg7[%c9, %c0_13] : memref<16x128xf32, #tpu.memory_space<vmem>>, vector<1x128xf32>
    tpu.vector_store %arg7[%c9, %c0_13], %15 {strides = array<i32>} : memref<16x128xf32, #tpu.memory_space<vmem>>, vector<1x128xf32>,
    %c0_14 = arith.constant 0 : index
    %c0_15 = arith.constant 0 : index
    %17 = vector.load %arg7[%c0_14, %c0_15] : memref<16x128xf32, #tpu.memory_space<vmem>>, vector<16x128xf32>
    %c0_16 = arith.constant 0 : index
    %c0_17 = arith.constant 0 : index
    %18 = vector.load %arg4[%c0_16, %c0_17] : memref<128x128xf32, #tpu.memory_space<vmem>>, vector<128x128xf32>
    %cst_18 = arith.constant dense<0.000000e+00> : vector<16x128xf32>
    %19 = tpu.matmul %17, %18, %cst_18 {dimension_numbers = #tpu.dot_dimension_numbers<[1], [0], [0], [1], [0, 0, 1, 1], [], []>} : vector<16x128xf32>, vector<128x128xf32>, vector<16x128xf32> -> vector<16x128xf32>
    %c0_19 = arith.constant 0 : index
    %c0_20 = arith.constant 0 : index
    %20 = vector.load %arg5[%c0_19, %c0_20] : memref<1x128xf32, #tpu.memory_space<vmem>>, vector<1x128xf32>
    %21 = vector.broadcast %20 : vector<1x128xf32> to vector<16x128xf32>
    %22 = arith.addf %19, %21 : vector<16x128xf32>
    %c0_21 = arith.constant 0 : index
    %c0_22 = arith.constant 0 : index
    %23 = vector.load %arg6[%c0_21, %c0_22] : memref<16x128xf32, #tpu.memory_space<vmem>>, vector<16x128xf32>
    tpu.vector_store %arg6[%c0_21, %c0_22], %22 {strides = array<i32>} : memref<16x128xf32, #tpu.memory_space<vmem>>, vector<16x128xf32>,
    return
  }
  func.func @transform_0(%arg0: i32) -> (i32, i32) {
    %c0_i32 = arith.constant 0 : i32
    %c0_i32_0 = arith.constant 0 : i32
    %c0_i32_1 = arith.constant 0 : i32
    return %c0_i32, %c0_i32_0 : i32, i32
  }
  func.func @transform_1(%arg0: i32) -> (i32, i32) {
    %c0_i32 = arith.constant 0 : i32
    %c0_i32_0 = arith.constant 0 : i32
    %c0_i32_1 = arith.constant 0 : i32
    return %c0_i32, %c0_i32_0 : i32, i32
  }
  func.func @transform_2(%arg0: i32) -> (i32, i32) {
    %c0_i32 = arith.constant 0 : i32
    %c0_i32_0 = arith.constant 0 : i32
    %c0_i32_1 = arith.constant 0 : i32
    return %c0_i32, %c0_i32_0 : i32, i32
  }
  func.func @transform_3(%arg0: i32) -> (i32, i32) {
    %c0_i32 = arith.constant 0 : i32
    %c0_i32_0 = arith.constant 0 : i32
    %c0_i32_1 = arith.constant 0 : i32
    return %c0_i32, %c0_i32_0 : i32, i32
  }
  func.func @transform_4(%arg0: i32) -> (i32, i32) {
    %c0_i32 = arith.constant 0 : i32
    %c0_i32_0 = arith.constant 0 : i32
    %c0_i32_1 = arith.constant 0 : i32
    return %c0_i32, %c0_i32_0 : i32, i32
  }
  func.func @transform_5(%arg0: i32) -> (i32, i32) {
    %c0_i32 = arith.constant 0 : i32
    %c0_i32_0 = arith.constant 0 : i32
    %c0_i32_1 = arith.constant 0 : i32
    return %c0_i32, %c0_i32_0 : i32, i32
  }
}

</mosaic_0001>

<bundles_post_ra>
// kernel: tpu_custom_call.1
= control target key start
LH: loop header
LB: loop body
LE: loop exit
PB: predicated region body
PF: predicated region fallthrough
CT: control target
= control target key end

     0   :  { %10 = vsyncpa [#allocation4], 0  ;;  %s663_s0 = inlined_call_operand.hbm [shape: f32[8,128], index: 0, kind: input, shape index: {}]   ;;  %s664_s1 = inlined_call_operand.hbm [shape: f32[128,128], index: 1, kind: input, shape index: {}]   ;;  %s665_s2 = inlined_call_operand.vmem [shape: f32[1,128], index: 2, kind: input, shape index: {}]   ;;  %s666_s3 = inlined_call_operand.hbm [shape: f32[128,128], index: 3, kind: input, shape index: {}]   ;;  %s667_s4 = inlined_call_operand.vmem [shape: f32[1,128], index: 4, kind: input, shape index: {}]   ;;  %s668_s5 = inlined_call_operand.hbm [shape: f32[16,128], index: 5, kind: output, shape index: {}]  }
   0x1   :  { %11 = vsyncpa [#allocation7], 0 }
   0x2   :  { %12 = vsyncpa [#allocation5], 0  ;;  %s561_s18 = smov [#allocation6]   ;;  %s467_s22 = scalar_lea.hbm %s664_s1, 2048 }
   0x3   :  { %s28_s19 = sshll.u32 %s561_s18, 4  ;;  %p468_p0 = scmp.ne.s32.totalorder %s664_s1, %s467_s22  ;;  %s29_s19 = int_to_ptr.vmem [resolvable:$true] %s28_s19 }
   0x4   :  { %p471_p1 = scmp.lt.u32.totalorder %s467_s22, %s664_s1 }
   0x6   :  { %p473_p2 = pnand %p471_p1, %p468_p0 }
   0x8   :  { %476 = shalt.err (!%p473_p2)
}
   0x9   :  { %s477_s27 = scalar_lea.vmem %s29_s19, 2048  ;;  %p482_p4 = scmp.lt.s32.totalorder %s29_s19, %s29_s19 }
   0xa   :  { %p478_p3 = scmp.ne.s32.totalorder %s29_s19, %s477_s27  ;;  %p483_p5 = scmp.lt.s32.totalorder %s477_s27, %s477_s27 }
   0xc   :  { %p484_p6 = por %p483_p5, %p482_p4 }
   0xe   :  { %p485_p7 = pnand %p484_p6, %p478_p3 }
  0x10   :  { %488 = shalt.err (!%p485_p7)
}
  0x11   :  { %s562_s28 = smov 128   ;;  %s563_s29 = smov 8  }
  0x12   :  { %34 = dma.hbm_to_vmem [thread:$0]  %s664_s1, 2048, %s29_s19, [#allocation7], %s562_s28, %s562_s28, %s563_s29  }
  0x13   :  { %s564_s7 = smov [#allocation3]   ;;  %s565_s9 = smov [#allocation8]  }
  0x14   :  { %s19_s8 = sshll.u32 %s564_s7, 4  ;;  %s42_s10 = sshll.u32 %s565_s9, 4  ;;  %s20_s8 = int_to_ptr.vmem [resolvable:$true] %s19_s8  ;;  %s43_s10 = int_to_ptr.vmem [resolvable:$true] %s42_s10 }
  0x15   :  { %s489_s13 = scalar_lea.hbm %s663_s0, 128 }
  0x16   :  { %p490_p8 = scmp.ne.s32.totalorder %s663_s0, %s489_s13  ;;  %p493_p9 = scmp.lt.u32.totalorder %s489_s13, %s663_s0 }
  0x18   :  { %p495_p10 = pnand %p493_p9, %p490_p8 }
  0x1a   :  { %498 = shalt.err (!%p495_p10)
}
  0x1b   :  { %s499_s1 = scalar_lea.vmem %s20_s8, 128  ;;  %p504_p12 = scmp.lt.s32.totalorder %s20_s8, %s20_s8 }
  0x1c   :  { %p500_p11 = scmp.ne.s32.totalorder %s20_s8, %s499_s1  ;;  %p505_p13 = scmp.lt.s32.totalorder %s499_s1, %s499_s1 }
  0x1e   :  { %p506_p0 = por %p505_p13, %p504_p12 }
  0x20   :  { %p507_p1 = pnand %p506_p0, %p500_p11 }
  0x22   :  { %510 = shalt.err (!%p507_p1)
}
  0x23   :  { %22 = dma.hbm_to_vmem [thread:$0]  %s663_s0, 128, %s20_s8, [#allocation4]  }
  0x24   :  { %s511_s22 = scalar_lea.hbm %s666_s3, 2048 }
  0x25   :  { %p512_p2 = scmp.ne.s32.totalorder %s666_s3, %s511_s22  ;;  %p515_p3 = scmp.lt.u32.totalorder %s511_s22, %s666_s3 }
  0x27   :  { %p517_p4 = pnand %p515_p3, %p512_p2 }
  0x29   :  { %520 = shalt.err (!%p517_p4)
}
  0x2a   :  { %s521_s27 = scalar_lea.vmem %s43_s10, 2048  ;;  %p526_p6 = scmp.lt.s32.totalorder %s43_s10, %s43_s10 }
  0x2b   :  { %p522_p5 = scmp.ne.s32.totalorder %s43_s10, %s521_s27  ;;  %p527_p7 = scmp.lt.s32.totalorder %s521_s27, %s521_s27 }
  0x2d   :  { %p528_p8 = por %p527_p7, %p526_p6 }
  0x2f   :  { %p529_p9 = pnand %p528_p8, %p522_p5 }
  0x31   :  { %532 = shalt.err (!%p529_p9)
}
  0x32   :  { %48 = dma.hbm_to_vmem [thread:$0]  %s666_s3, 2048, %s43_s10, [#allocation7], %s562_s28, %s562_s28, %s563_s29  }
  0x33   :  { %555 = dma.done.wait [#allocation4], 128  }
  0x34   :  { %556 = vsyncadd [#allocation4], 4294967168 }
  0x35   :  { %557 = dma.done.wait [#allocation7], 4096  }
  0x36   :  { %558 = vsyncadd [#allocation7], 4294963200  ;;  %v566_v0 = vmov 0.0|0.0   ;;  %vm567_vm0 = vmmov 0   ;;  %v568_v1 = vmov 0.0   ;;  %v61_v2 = vld [vmem:[#allocation6] sm:$0xff] }
  0x37   :  { %402 = vmatprep.subr.bf16.mxu0 %v566_v0  ;;  %364 = vmatprep.mubr.msk.f32.mxu0 %vm567_vm0, %v568_v1  ;;  %155 = vst [vmem:[#allocation2 + $0x8] sm:$0xff] %v568_v1  ;;  %v62_v3 = vld [vmem:[#allocation6 + $0x8] sm:$0xff]  ;;  %v63_v4 = vld [vmem:[#allocation6 + $0x10] sm:$0xff]  ;;  %v64_v6 = vld [vmem:[#allocation6 + $0x18] sm:$0xff]  ;;  %vm157_vm1 = vcmask 1042432   ;;  %vm166_vm2 = vcmask 1045507  }
  0x38   :  { %v403_v5 = vpack.c.bf16 %v62_v3, %v61_v2  ;;  %v406_v7 = vpack.c.bf16 %v64_v6, %v63_v4  ;;  %v65_v8 = vld [vmem:[#allocation6 + $0x20] sm:$0xff]  ;;  %v66_v9 = vld [vmem:[#allocation6 + $0x28] sm:$0xff]  ;;  %v179_v12 = vld [vmem:[#allocation8 + $0x10] sm:$0xff]  ;;  %s569_s8 = smov [#allocation9]  }
  0x39   :  { %v177_v10 = vld [vmem:[#allocation8] sm:$0xff]  ;;  %v178_v11 = vld [vmem:[#allocation8 + $0x8] sm:$0xff]  ;;  %v180_v13 = vld [vmem:[#allocation8 + $0x18] sm:$0xff]  ;;  %v409_v14 = vpack.c.bf16 %v66_v9, %v65_v8  ;;  %s282_s9 = sshll.u32 %s569_s8, 4  ;;  %s283_s9 = int_to_ptr.vmem [resolvable:$true] %s282_s9 }
  0x3a   :  { %404 = vmatpush3.bf16.msra.mxu0 %v403_v5  ;;  %v426_v15 = vpack.c.bf16 %v178_v11, %v177_v10  ;;  %v430_v16 = vpack.c.bf16 %v180_v13, %v179_v12  ;;  %v67_v17 = vld [vmem:[#allocation6 + $0x30] sm:$0xff]  ;;  %v68_v18 = vld [vmem:[#allocation6 + $0x38] sm:$0xff]  ;;  %v69_v20 = vld [vmem:[#allocation6 + $0x40] sm:$0xff]  ;;  %s533_s10 = scalar_lea.vmem %s283_s9, 256  ;;  %p538_p11 = scmp.lt.s32.totalorder %s283_s9, %s283_s9 }
  0x3b   :  { %405 = vmatprep.subr.bf16.mxu0 %v566_v0  ;;  %v412_v19 = vpack.c.bf16 %v68_v18, %v67_v17  ;;  %v70_v21 = vld [vmem:[#allocation6 + $0x48] sm:$0xff]  ;;  %v71_v23 = vld [vmem:[#allocation6 + $0x50] sm:$0xff]  ;;  %v72_v24 = vld [vmem:[#allocation6 + $0x58] sm:$0xff]  ;;  %p534_p10 = scmp.ne.s32.totalorder %s283_s9, %s533_s10  ;;  %p539_p12 = scmp.lt.s32.totalorder %s533_s10, %s533_s10 }
  0x3c   :  { %427 = vmatprep.subr.bf16.mxu1 %v426_v15  ;;  %v415_v22 = vpack.c.bf16 %v70_v21, %v69_v20  ;;  %v418_v25 = vpack.c.bf16 %v72_v24, %v71_v23  ;;  %v73_v26 = vld [vmem:[#allocation6 + $0x60] sm:$0xff]  ;;  %v74_v27 = vld [vmem:[#allocation6 + $0x68] sm:$0xff]  ;;  %v75_v29 = vld [vmem:[#allocation6 + $0x70] sm:$0xff] }
  0x3d   :  { %429 = vmatpush3.bf16.msra.mxu1 %v426_v15  ;;  %v421_v28 = vpack.c.bf16 %v74_v27, %v73_v26  ;;  %v76_v30 = vld [vmem:[#allocation6 + $0x78] sm:$0xff]  ;;  %v181_v33 = vld [vmem:[#allocation8 + $0x20] sm:$0xff]  ;;  %v182_v34 = vld [vmem:[#allocation8 + $0x28] sm:$0xff]  ;;  %p540_p13 = por %p539_p12, %p538_p11 }
  0x3e   :  { %407 = vmatpush3.bf16.msra.mxu0 %v406_v7  ;;  %431 = vmatprep.subr.bf16.mxu1 %v430_v16  ;;  %v424_v31 = vpack.c.bf16 %v76_v30, %v75_v29  ;;  %v60_v32 = vld [vmem:[#allocation3] sm:$0xff]  ;;  %v434_v35 = vpack.c.bf16 %v182_v34, %v181_v33  ;;  %v183_v36 = vld [vmem:[#allocation8 + $0x30] sm:$0xff]  ;;  %v185_v39 = vld [vmem:[#allocation8 + $0x40] sm:$0xff] }
  0x3f   :  { %408 = vmatprep.subr.bf16.mxu0 %v566_v0  ;;  %v184_v37 = vld [vmem:[#allocation8 + $0x38] sm:$0xff]  ;;  %v186_v40 = vld [vmem:[#allocation8 + $0x48] sm:$0xff]  ;;  %v187_v42 = vld [vmem:[#allocation8 + $0x50] sm:$0xff]  ;;  %p541_p0 = pnand %p540_p13, %p534_p10 }
  0x40   :  { %v438_v38 = vpack.c.bf16 %v184_v37, %v183_v36  ;;  %v442_v41 = vpack.c.bf16 %v186_v40, %v185_v39  ;;  %v188_v43 = vld [vmem:[#allocation8 + $0x58] sm:$0xff]  ;;  %v189_v45 = vld [vmem:[#allocation8 + $0x60] sm:$0xff]  ;;  %v190_v46 = vld [vmem:[#allocation8 + $0x68] sm:$0xff] }
  0x41   :  { %433 = vmatpush3.bf16.msra.mxu1 %v430_v16  ;;  %v446_v44 = vpack.c.bf16 %v188_v43, %v187_v42  ;;  %v450_v47 = vpack.c.bf16 %v190_v46, %v189_v45  ;;  %v191_v48 = vld [vmem:[#allocation8 + $0x70] sm:$0xff]  ;;  %v192_v49 = vld [vmem:[#allocation8 + $0x78] sm:$0xff]  ;;  %v295_v51 = vld [vmem:[%s665_s2] ss:$0 sm:$0xff] }
  0x42   :  { %410 = vmatpush3.bf16.msra.mxu0 %v409_v14  ;;  %435 = vmatprep.subr.bf16.mxu1 %v434_v35  ;;  %v454_v50 = vpack.c.bf16 %v192_v49, %v191_v48  ;;  %v296_v6 = vld [vmem:[%s667_s4] ss:$0 sm:$0xff] }
  0x43   :  { %411 = vmatprep.subr.bf16.mxu0 %v566_v0 }
  0x45   :  { %437 = vmatpush3.bf16.msra.mxu1 %v434_v35 }
  0x46   :  { %413 = vmatpush3.bf16.msra.mxu0 %v412_v19  ;;  %439 = vmatprep.subr.bf16.mxu1 %v438_v38 }
  0x47   :  { %414 = vmatprep.subr.bf16.mxu0 %v566_v0 }
  0x49   :  { %441 = vmatpush3.bf16.msra.mxu1 %v438_v38 }
  0x4a   :  { %416 = vmatpush3.bf16.msra.mxu0 %v415_v22  ;;  %443 = vmatprep.subr.bf16.mxu1 %v442_v41 }
  0x4b   :  { %417 = vmatprep.subr.bf16.mxu0 %v566_v0 }
  0x4d   :  { %445 = vmatpush3.bf16.msra.mxu1 %v442_v41 }
  0x4e   :  { %419 = vmatpush3.bf16.msra.mxu0 %v418_v25  ;;  %447 = vmatprep.subr.bf16.mxu1 %v446_v44 }
  0x4f   :  { %420 = vmatprep.subr.bf16.mxu0 %v566_v0 }
  0x51   :  { %449 = vmatpush3.bf16.msra.mxu1 %v446_v44 }
  0x52   :  { %422 = vmatpush3.bf16.msra.mxu0 %v421_v28  ;;  %451 = vmatprep.subr.bf16.mxu1 %v450_v47 }
  0x53   :  { %423 = vmatprep.subr.bf16.mxu0 %v566_v0 }
  0x55   :  { %453 = vmatpush3.bf16.msra.mxu1 %v450_v47 }
  0x56   :  { %425 = vmatpush3.bf16.msra.mxu0 %v424_v31  ;;  %455 = vmatprep.subr.bf16.mxu1 %v454_v50 }
  0x59   :  { %365 = vmatmul.mubr.f32.vlgmr.msra.gmra.mrb[0].mxu0 %v60_v32  ;;  %457 = vmatpush3.bf16.msra.mxu1 %v454_v50 }
 0x12c   :  { %v150_v52 = vpop.f32.mrb[0].mxu0 }
 0x12d   :  { %v151_v53 = vadd.f32 %v295_v51, %v150_v52  ;;  %v366_v54 = vpop.f32.mrb[1].mxu0 }
 0x12f   :  { %v158_v55 = vsel %vm157_vm1, %v151_v53, -inf  ;;  %v167_v56 = vsel %vm166_vm2, %v151_v53, -inf  ;;  %399 = vmatprep.mubr.f32.mxu1 %v151_v53 }
 0x130   :  { %v159_v57 = vrot.slane %v158_v55, 4  ;;  %v168_v58 = vrot.slane %v167_v56, 4 }
 0x132   :  { %v160_v59 = vmax.f32 %v158_v55, %v159_v57  ;;  %v169_v60 = vmax.f32 %v167_v56, %v168_v58 }
 0x134   :  { %v161_v61 = vrot.slane %v160_v59, 2  ;;  %v170_v62 = vrot.slane %v169_v60, 2 }
 0x136   :  { %v162_v63 = vmax.f32 %v160_v59, %v161_v61  ;;  %v171_v0 = vmax.f32 %v169_v60, %v170_v62 }
 0x138   :  { %v163_v1 = vrot.slane %v162_v63, 1  ;;  %v172_v2 = vrot.slane %v171_v0, 1 }
 0x13a   :  { %v164_v3 = vmax.f32 %v162_v63, %v163_v1  ;;  %v173_v4 = vmax.f32 %v171_v0, %v172_v2 }
 0x13c   :  { %165 = vst [vmem:[#allocation2 + $0x8] sm:$0x1] %v164_v3  ;;  %174 = vst [vmem:[#allocation2 + $0x9] sm:$0x1] %v173_v4 }
 0x143   :  { %v176_v5 = vld [vmem:[#allocation2 + $0x8] sm:$0xff] }
 0x144   :  { %400 = vmatmul.mubr.f32.vlgmr.msra.gmra.mrb[0].mxu1 %v176_v5 }
 0x217   :  { %v401_v7 = vpop.f32.mrb[0].mxu1 }
 0x218   :  { %v272_v8 = vadd.f32 %v401_v7, %v296_v6  ;;  %v266_v9 = vpop.f32.mrb[1].mxu1 }
 0x219   :  { %v267_v10 = vadd.f32 %v296_v6, %v266_v9 }
 0x21a   :  { %276 = vst [vmem:[#allocation9 + $0x8] sm:$0xff] %v272_v8 }
 0x21b   :  { %275 = vst [vmem:[#allocation9] sm:$0xff] %v267_v10 }
 0x21c   :  { %544 = shalt.err (!%p541_p0)
}
 0x21d   :  { %s545_s4 = scalar_lea.hbm %s668_s5, 256 }
 0x21e   :  { %p546_p1 = scmp.ne.s32.totalorder %s668_s5, %s545_s4  ;;  %p549_p2 = scmp.lt.u32.totalorder %s545_s4, %s668_s5 }
 0x220   :  { %p551_p3 = pnand %p549_p2, %p546_p1 }
 0x222   :  { %554 = shalt.err (!%p551_p3)
}
 0x223   :  { %288 = dma.vmem_to_hbm [thread:$0]  %s283_s9, 256, %s668_s5, [#allocation5], %s562_s28, %s562_s28, %s563_s29  }
 0x224   :  { %559 = dma.done.wait [#allocation5], 256  }
 0x225   :  { %560 = vsyncadd [#allocation5], 4294967040 }
 0x226   :  { %292 = vsyncpa [#allocation4], 1 }
 0x227   :  { %293 = vsyncpa [#allocation7], 1 }
 0x228   :  { %294 = vsyncpa [#allocation5], 1 }

</bundles_post_ra>
